<compile_context>
chip_gen: v6e
topology: v6e:2x2x1
jax: 0.10.0
libtpu: 0.0.40
codegen_flags: <defaults>
</compile_context>

<pallas_src>
import jax
import jax.numpy as jnp
from jax.experimental import pallas as pl
from jax.experimental.pallas import tpu as pltpu

LN_EPS = 1e-5


def _node_scalar_output_kernel(x_ref, w1_ref, b1_ref, w2_ref, b2_ref,
                               w3_ref, b3_ref, out_ref):
    # x_ref: [9, F, tn]  (9 = row-major flattened 3x3 components, nodes on lanes)
    xx = x_ref[0].astype(jnp.float32)
    xy = x_ref[1].astype(jnp.float32)
    xz = x_ref[2].astype(jnp.float32)
    yx = x_ref[3].astype(jnp.float32)
    yy = x_ref[4].astype(jnp.float32)
    yz = x_ref[5].astype(jnp.float32)
    zx = x_ref[6].astype(jnp.float32)
    zy = x_ref[7].astype(jnp.float32)
    zz = x_ref[8].astype(jnp.float32)

    trace = xx + yy + zz
    diag_mean = trace * (1.0 / 3.0)

    # I = diag_mean * eye(3)  ->  ||I||^2 = 3 * diag_mean^2
    i_norm = 3.0 * diag_mean * diag_mean

    # A = 0.5 * (X - X^T)  (antisymmetric; off-diagonals counted twice)
    a_xy = 0.5 * (xy - yx)
    a_xz = 0.5 * (xz - zx)
    a_yz = 0.5 * (yz - zy)
    a_norm = 2.0 * (a_xy * a_xy + a_xz * a_xz + a_yz * a_yz)

    # S = 0.5 * (X + X^T) - I  (symmetric traceless)
    s_xx = xx - diag_mean
    s_yy = yy - diag_mean
    s_zz = zz - diag_mean
    s_xy = 0.5 * (xy + yx)
    s_xz = 0.5 * (xz + zx)
    s_yz = 0.5 * (yz + zy)
    s_norm = (s_xx * s_xx + s_yy * s_yy + s_zz * s_zz
              + 2.0 * (s_xy * s_xy + s_xz * s_xz + s_yz * s_yz))

    h = jnp.concatenate([i_norm, a_norm, s_norm], axis=0)        # [3F, tn]

    # LayerNorm over the channel (sublane) axis; gamma/beta are folded into
    # w1/b1 by the wrapper, so only the normalization remains here.
    mean = jnp.mean(h, axis=0, keepdims=True)
    var = jnp.mean((h - mean) * (h - mean), axis=0, keepdims=True)
    h = (h - mean) * jax.lax.rsqrt(var + LN_EPS)

    # MLP in transposed form: [H,C] @ [C,tn] + [H,1]
    h = jnp.dot(w1_ref[...], h, preferred_element_type=jnp.float32) + b1_ref[...]
    h = h * jax.nn.sigmoid(h)
    h = jnp.dot(w2_ref[...], h, preferred_element_type=jnp.float32) + b2_ref[...]
    h = h * jax.nn.sigmoid(h)
    h = jnp.dot(w3_ref[...], h, preferred_element_type=jnp.float32) + b3_ref[...]

    out_ref[...] = h.astype(out_ref.dtype)                       # [T_pad, tn]


def _round_up(x, m):
    return ((x + m - 1) // m) * m


def _choose_tile_n(n_pad128):
    # Biggest lane-dense tile, but keep >= 2 grid steps for large N so the
    # "parallel" grid axis can be split across v7x's two TensorCores.
    if n_pad128 <= 256:
        return 128
    return max(128, min(1024, (n_pad128 // 2) // 128 * 128))


def node_scalar_output(X_i, gamma, beta, w1, b1, w2, b2, w3, b3, *, tile_n=None):
    """X_i: [N, F, 3, 3] f32; gamma/beta: [1, 3F]; returns [N, num_tasks] f32."""
    N, F = X_i.shape[0], X_i.shape[1]
    T = w3.shape[1]
    T_pad = _round_up(T, 8)          # full-sublane output store

    if tile_n is None:
        tile_n = _choose_tile_n(_round_up(max(N, 1), 128))
    n_pad = _round_up(max(N, 1), tile_n)

    # nodes-on-lanes relayout: [N, F, 3, 3] -> [9, F, n_pad]
    x = jnp.transpose(X_i.reshape(N, F, 9), (2, 1, 0))
    if n_pad != N:
        x = jnp.pad(x, ((0, 0), (0, 0), (0, n_pad - N)))

    # Fold LayerNorm affine into the first Linear; pre-transpose all weights.
    w1_eff = gamma.reshape(-1, 1) * w1                 # [3F, H1]
    b1_eff = beta @ w1 + b1                            # [1, H1]
    w1t, b1t = w1_eff.T, b1_eff.T                      # [H1, 3F], [H1, 1]
    w2t, b2t = w2.T, b2.T                              # [H2, H1], [H2, 1]
    w3t, b3t = w3.T, b3.T                              # [T, H2],  [T, 1]
    if T_pad != T:                                     # pad task rows with zeros
        w3t = jnp.pad(w3t, ((0, T_pad - T), (0, 0)))
        b3t = jnp.pad(b3t, ((0, T_pad - T), (0, 0)))

    full = lambda i: (0, 0)
    out_t = pl.pallas_call(
        _node_scalar_output_kernel,
        out_shape=jax.ShapeDtypeStruct((T_pad, n_pad), jnp.float32),
        grid_spec=pltpu.PrefetchScalarGridSpec(
            num_scalar_prefetch=0,
            grid=(n_pad // tile_n,),
            in_specs=[
                pl.BlockSpec((9, F, tile_n), lambda i: (0, 0, i)),  # X tile
                pl.BlockSpec(w1t.shape, full),
                pl.BlockSpec(b1t.shape, full),
                pl.BlockSpec(w2t.shape, full),
                pl.BlockSpec(b2t.shape, full),
                pl.BlockSpec(w3t.shape, full),
                pl.BlockSpec(b3t.shape, full),
            ],
            out_specs=pl.BlockSpec((T_pad, tile_n), lambda i: (0, i)),
        ),
        compiler_params=pltpu.CompilerParams(
            dimension_semantics=("parallel",)),
    )(x, w1t, b1t, w2t, b2t, w3t, b3t)

    # [T_pad, n_pad] -> [N, T]  (tiny transpose in the wrapper; kernel stays lane-dense)
    return out_t[:T, :N].T


def ref_forward(X, gamma, beta, w1, b1, w2, b2, w3, b3):
    """Pure-JAX reference matching the PyTorch module."""
    tr = jnp.trace(X, axis1=-2, axis2=-1)
    I = (tr / 3.0)[..., None, None] * jnp.eye(3, dtype=X.dtype)
    A = 0.5 * (X - jnp.swapaxes(X, -1, -2))
    S = 0.5 * (X + jnp.swapaxes(X, -1, -2)) - I
    tn = lambda t: jnp.sum(t * t, axis=(-2, -1))
    h = jnp.concatenate([tn(I), tn(A), tn(S)], axis=-1)
    mean = h.mean(-1, keepdims=True)
    var = ((h - mean) ** 2).mean(-1, keepdims=True)
    h = (h - mean) / jnp.sqrt(var + LN_EPS) * gamma[0] + beta[0]
    silu = lambda v: v * jax.nn.sigmoid(v)
    h = silu(h @ w1 + b1[0])
    h = silu(h @ w2 + b2[0])
    return h @ w3 + b3[0]


if __name__ == "__main__":
    # Module hyperparameters (small, consistent with the forward pass)
    num_nodes = 16
    num_features = 32
    mlp_hidden_dims = [64, 32]
    num_tasks = 4
    c_in = 3 * num_features

    key = jax.random.PRNGKey(0)
    kx, kg, kb, kw1, kb1, kw2, kb2, kw3, kb3 = jax.random.split(key, 9)

    # data['X_i'] : [N, F, 3, 3]
    X_i = jax.random.normal(kx, (num_nodes, num_features, 3, 3), dtype=jnp.float32)

    # Non-trivial LayerNorm affine so the gamma/beta folding is actually exercised.
    gamma = 1.0 + 0.1 * jax.random.normal(kg, (1, c_in), dtype=jnp.float32)
    beta = 0.05 * jax.random.normal(kb, (1, c_in), dtype=jnp.float32)
    w1 = 0.1 * jax.random.normal(kw1, (c_in, mlp_hidden_dims[0]), dtype=jnp.float32)
    b1 = 0.01 * jax.random.normal(kb1, (1, mlp_hidden_dims[0]), dtype=jnp.float32)
    w2 = 0.1 * jax.random.normal(kw2, (mlp_hidden_dims[0], mlp_hidden_dims[1]), dtype=jnp.float32)
    b2 = 0.01 * jax.random.normal(kb2, (1, mlp_hidden_dims[1]), dtype=jnp.float32)
    w3 = 0.1 * jax.random.normal(kw3, (mlp_hidden_dims[1], num_tasks), dtype=jnp.float32)
    b3 = 0.01 * jax.random.normal(kb3, (1, num_tasks), dtype=jnp.float32)

    out = node_scalar_output(X_i, gamma, beta, w1, b1, w2, b2, w3, b3)
    out = jax.block_until_ready(out)

    expected = ref_forward(X_i, gamma, beta, w1, b1, w2, b2, w3, b3)
    assert out.shape == (num_nodes, num_tasks)
    assert jnp.allclose(out, expected, atol=1e-4, rtol=1e-4)
    print("KERNEL_OK")
</pallas_src>

<mosaic_0001>
module attributes {stable_mosaic.version = 11 : i64} {
  func.func @_node_scalar_output_kernel(%arg0: i32, %arg1: memref<9x32x128xf32, #tpu.memory_space<vmem>>, %arg2: memref<64x96xf32, #tpu.memory_space<vmem>>, %arg3: memref<64x1xf32, #tpu.memory_space<vmem>>, %arg4: memref<32x64xf32, #tpu.memory_space<vmem>>, %arg5: memref<32x1xf32, #tpu.memory_space<vmem>>, %arg6: memref<8x32xf32, #tpu.memory_space<vmem>>, %arg7: memref<8x1xf32, #tpu.memory_space<vmem>>, %arg8: memref<8x128xf32, #tpu.memory_space<vmem>>) attributes {dimension_semantics = [#tpu.dimension_semantics<parallel>], iteration_bounds = array<i64: 1>, scalar_prefetch = 0 : i64, scratch_operands = 0 : i64, tpu.core_type = #tpu.core_type<tc>, window_params = [{transform_indices = @transform_0, window_bounds = array<i64: 9, 32, 128>}, {pipeline_mode = #tpu.pipeline_mode<synchronous>, transform_indices = @transform_1, window_bounds = array<i64: 64, 96>}, {pipeline_mode = #tpu.pipeline_mode<synchronous>, transform_indices = @transform_2, window_bounds = array<i64: 64, 1>}, {pipeline_mode = #tpu.pipeline_mode<synchronous>, transform_indices = @transform_3, window_bounds = array<i64: 32, 64>}, {pipeline_mode = #tpu.pipeline_mode<synchronous>, transform_indices = @transform_4, window_bounds = array<i64: 32, 1>}, {pipeline_mode = #tpu.pipeline_mode<synchronous>, transform_indices = @transform_5, window_bounds = array<i64: 8, 32>}, {pipeline_mode = #tpu.pipeline_mode<synchronous>, transform_indices = @transform_6, window_bounds = array<i64: 8, 1>}, {transform_indices = @transform_7, window_bounds = array<i64: 8, 128>}]} {
    %c0 = arith.constant 0 : index
    %c0_0 = arith.constant 0 : index
    %c0_1 = arith.constant 0 : index
    %0 = vector.load %arg1[%c0, %c0_0, %c0_1] : memref<9x32x128xf32, #tpu.memory_space<vmem>>, vector<1x32x128xf32>
    %1 = vector.shape_cast %0 : vector<1x32x128xf32> to vector<32x128xf32>
    %c1 = arith.constant 1 : index
    %c0_2 = arith.constant 0 : index
    %c0_3 = arith.constant 0 : index
    %2 = vector.load %arg1[%c1, %c0_2, %c0_3] : memref<9x32x128xf32, #tpu.memory_space<vmem>>, vector<1x32x128xf32>
    %3 = vector.shape_cast %2 : vector<1x32x128xf32> to vector<32x128xf32>
    %c2 = arith.constant 2 : index
    %c0_4 = arith.constant 0 : index
    %c0_5 = arith.constant 0 : index
    %4 = vector.load %arg1[%c2, %c0_4, %c0_5] : memref<9x32x128xf32, #tpu.memory_space<vmem>>, vector<1x32x128xf32>
    %5 = vector.shape_cast %4 : vector<1x32x128xf32> to vector<32x128xf32>
    %c3 = arith.constant 3 : index
    %c0_6 = arith.constant 0 : index
    %c0_7 = arith.constant 0 : index
    %6 = vector.load %arg1[%c3, %c0_6, %c0_7] : memref<9x32x128xf32, #tpu.memory_space<vmem>>, vector<1x32x128xf32>
    %7 = vector.shape_cast %6 : vector<1x32x128xf32> to vector<32x128xf32>
    %c4 = arith.constant 4 : index
    %c0_8 = arith.constant 0 : index
    %c0_9 = arith.constant 0 : index
    %8 = vector.load %arg1[%c4, %c0_8, %c0_9] : memref<9x32x128xf32, #tpu.memory_space<vmem>>, vector<1x32x128xf32>
    %9 = vector.shape_cast %8 : vector<1x32x128xf32> to vector<32x128xf32>
    %c5 = arith.constant 5 : index
    %c0_10 = arith.constant 0 : index
    %c0_11 = arith.constant 0 : index
    %10 = vector.load %arg1[%c5, %c0_10, %c0_11] : memref<9x32x128xf32, #tpu.memory_space<vmem>>, vector<1x32x128xf32>
    %11 = vector.shape_cast %10 : vector<1x32x128xf32> to vector<32x128xf32>
    %c6 = arith.constant 6 : index
    %c0_12 = arith.constant 0 : index
    %c0_13 = arith.constant 0 : index
    %12 = vector.load %arg1[%c6, %c0_12, %c0_13] : memref<9x32x128xf32, #tpu.memory_space<vmem>>, vector<1x32x128xf32>
    %13 = vector.shape_cast %12 : vector<1x32x128xf32> to vector<32x128xf32>
    %c7 = arith.constant 7 : index
    %c0_14 = arith.constant 0 : index
    %c0_15 = arith.constant 0 : index
    %14 = vector.load %arg1[%c7, %c0_14, %c0_15] : memref<9x32x128xf32, #tpu.memory_space<vmem>>, vector<1x32x128xf32>
    %15 = vector.shape_cast %14 : vector<1x32x128xf32> to vector<32x128xf32>
    %c8 = arith.constant 8 : index
    %c0_16 = arith.constant 0 : index
    %c0_17 = arith.constant 0 : index
    %16 = vector.load %arg1[%c8, %c0_16, %c0_17] : memref<9x32x128xf32, #tpu.memory_space<vmem>>, vector<1x32x128xf32>
    %17 = vector.shape_cast %16 : vector<1x32x128xf32> to vector<32x128xf32>
    %18 = arith.addf %1, %9 : vector<32x128xf32>
    %19 = arith.addf %18, %17 : vector<32x128xf32>
    %cst = arith.constant 0.333333343 : f32
    %20 = vector.broadcast %cst : f32 to vector<32x128xf32>
    %21 = arith.mulf %19, %20 : vector<32x128xf32>
    %cst_18 = arith.constant 3.000000e+00 : f32
    %22 = vector.broadcast %cst_18 : f32 to vector<32x128xf32>
    %23 = arith.mulf %22, %21 : vector<32x128xf32>
    %24 = arith.mulf %23, %21 : vector<32x128xf32>
    %25 = arith.subf %3, %7 : vector<32x128xf32>
    %cst_19 = arith.constant 5.000000e-01 : f32
    %26 = vector.broadcast %cst_19 : f32 to vector<32x128xf32>
    %27 = arith.mulf %26, %25 : vector<32x128xf32>
    %28 = arith.subf %5, %13 : vector<32x128xf32>
    %cst_20 = arith.constant 5.000000e-01 : f32
    %29 = vector.broadcast %cst_20 : f32 to vector<32x128xf32>
    %30 = arith.mulf %29, %28 : vector<32x128xf32>
    %31 = arith.subf %11, %15 : vector<32x128xf32>
    %cst_21 = arith.constant 5.000000e-01 : f32
    %32 = vector.broadcast %cst_21 : f32 to vector<32x128xf32>
    %33 = arith.mulf %32, %31 : vector<32x128xf32>
    %34 = arith.mulf %27, %27 : vector<32x128xf32>
    %35 = arith.mulf %30, %30 : vector<32x128xf32>
    %36 = arith.addf %34, %35 : vector<32x128xf32>
    %37 = arith.mulf %33, %33 : vector<32x128xf32>
    %38 = arith.addf %36, %37 : vector<32x128xf32>
    %cst_22 = arith.constant 2.000000e+00 : f32
    %39 = vector.broadcast %cst_22 : f32 to vector<32x128xf32>
    %40 = arith.mulf %39, %38 : vector<32x128xf32>
    %41 = arith.subf %1, %21 : vector<32x128xf32>
    %42 = arith.subf %9, %21 : vector<32x128xf32>
    %43 = arith.subf %17, %21 : vector<32x128xf32>
    %44 = arith.addf %3, %7 : vector<32x128xf32>
    %cst_23 = arith.constant 5.000000e-01 : f32
    %45 = vector.broadcast %cst_23 : f32 to vector<32x128xf32>
    %46 = arith.mulf %45, %44 : vector<32x128xf32>
    %47 = arith.addf %5, %13 : vector<32x128xf32>
    %cst_24 = arith.constant 5.000000e-01 : f32
    %48 = vector.broadcast %cst_24 : f32 to vector<32x128xf32>
    %49 = arith.mulf %48, %47 : vector<32x128xf32>
    %50 = arith.addf %11, %15 : vector<32x128xf32>
    %cst_25 = arith.constant 5.000000e-01 : f32
    %51 = vector.broadcast %cst_25 : f32 to vector<32x128xf32>
    %52 = arith.mulf %51, %50 : vector<32x128xf32>
    %53 = arith.mulf %41, %41 : vector<32x128xf32>
    %54 = arith.mulf %42, %42 : vector<32x128xf32>
    %55 = arith.addf %53, %54 : vector<32x128xf32>
    %56 = arith.mulf %43, %43 : vector<32x128xf32>
    %57 = arith.addf %55, %56 : vector<32x128xf32>
    %58 = arith.mulf %46, %46 : vector<32x128xf32>
    %59 = arith.mulf %49, %49 : vector<32x128xf32>
    %60 = arith.addf %58, %59 : vector<32x128xf32>
    %61 = arith.mulf %52, %52 : vector<32x128xf32>
    %62 = arith.addf %60, %61 : vector<32x128xf32>
    %cst_26 = arith.constant 2.000000e+00 : f32
    %63 = vector.broadcast %cst_26 : f32 to vector<32x128xf32>
    %64 = arith.mulf %63, %62 : vector<32x128xf32>
    %65 = arith.addf %57, %64 : vector<32x128xf32>
    %66 = tpu.concatenate %24, %40, %65 in 0 : vector<32x128xf32>, vector<32x128xf32>, vector<32x128xf32> -> vector<96x128xf32>
    %cst_27 = arith.constant dense<0.000000e+00> : vector<128xf32>
    %67 = vector.multi_reduction <add>, %66, %cst_27 [0] : vector<96x128xf32> to vector<128xf32>
    %68 = vector.shape_cast %67 : vector<128xf32> to vector<1x128xf32>
    %cst_28 = arith.constant 9.600000e+01 : f32
    %69 = vector.broadcast %cst_28 : f32 to vector<1x128xf32>
    %70 = arith.divf %68, %69 : vector<1x128xf32>
    %71 = vector.broadcast %70 : vector<1x128xf32> to vector<96x128xf32>
    %72 = arith.subf %66, %71 : vector<96x128xf32>
    %73 = vector.broadcast %70 : vector<1x128xf32> to vector<96x128xf32>
    %74 = arith.subf %66, %73 : vector<96x128xf32>
    %75 = arith.mulf %72, %74 : vector<96x128xf32>
    %cst_29 = arith.constant dense<0.000000e+00> : vector<128xf32>
    %76 = vector.multi_reduction <add>, %75, %cst_29 [0] : vector<96x128xf32> to vector<128xf32>
    %77 = vector.shape_cast %76 : vector<128xf32> to vector<1x128xf32>
    %cst_30 = arith.constant 9.600000e+01 : f32
    %78 = vector.broadcast %cst_30 : f32 to vector<1x128xf32>
    %79 = arith.divf %77, %78 : vector<1x128xf32>
    %80 = vector.broadcast %70 : vector<1x128xf32> to vector<96x128xf32>
    %81 = arith.subf %66, %80 : vector<96x128xf32>
    %cst_31 = arith.constant 9.99999974E-6 : f32
    %82 = vector.broadcast %cst_31 : f32 to vector<1x128xf32>
    %83 = arith.addf %79, %82 : vector<1x128xf32>
    %84 = math.rsqrt %83 : vector<1x128xf32>
    %85 = vector.broadcast %84 : vector<1x128xf32> to vector<96x128xf32>
    %86 = arith.mulf %81, %85 : vector<96x128xf32>
    %c0_32 = arith.constant 0 : index
    %c0_33 = arith.constant 0 : index
    %87 = vector.load %arg2[%c0_32, %c0_33] : memref<64x96xf32, #tpu.memory_space<vmem>>, vector<64x96xf32>
    %cst_34 = arith.constant dense<0.000000e+00> : vector<64x128xf32>
    %88 = tpu.matmul %87, %86, %cst_34 {dimension_numbers = #tpu.dot_dimension_numbers<[1], [0], [0], [1], [0, 0, 1, 1], [], []>} : vector<64x96xf32>, vector<96x128xf32>, vector<64x128xf32> -> vector<64x128xf32>
    %c0_35 = arith.constant 0 : index
    %c0_36 = arith.constant 0 : index
    %89 = vector.load %arg3[%c0_35, %c0_36] : memref<64x1xf32, #tpu.memory_space<vmem>>, vector<64x1xf32>
    %90 = vector.broadcast %89 : vector<64x1xf32> to vector<64x128xf32>
    %91 = arith.addf %88, %90 : vector<64x128xf32>
    %92 = arith.negf %91 : vector<64x128xf32>
    %93 = math.exp %92 : vector<64x128xf32>
    %cst_37 = arith.constant 1.000000e+00 : f32
    %94 = vector.broadcast %cst_37 : f32 to vector<64x128xf32>
    %95 = arith.addf %94, %93 : vector<64x128xf32>
    %96 = arith.divf %94, %95 : vector<64x128xf32>
    %97 = arith.mulf %91, %96 : vector<64x128xf32>
    %c0_38 = arith.constant 0 : index
    %c0_39 = arith.constant 0 : index
    %98 = vector.load %arg4[%c0_38, %c0_39] : memref<32x64xf32, #tpu.memory_space<vmem>>, vector<32x64xf32>
    %cst_40 = arith.constant dense<0.000000e+00> : vector<32x128xf32>
    %99 = tpu.matmul %98, %97, %cst_40 {dimension_numbers = #tpu.dot_dimension_numbers<[1], [0], [0], [1], [0, 0, 1, 1], [], []>} : vector<32x64xf32>, vector<64x128xf32>, vector<32x128xf32> -> vector<32x128xf32>
    %c0_41 = arith.constant 0 : index
    %c0_42 = arith.constant 0 : index
    %100 = vector.load %arg5[%c0_41, %c0_42] : memref<32x1xf32, #tpu.memory_space<vmem>>, vector<32x1xf32>
    %101 = vector.broadcast %100 : vector<32x1xf32> to vector<32x128xf32>
    %102 = arith.addf %99, %101 : vector<32x128xf32>
    %103 = arith.negf %102 : vector<32x128xf32>
    %104 = math.exp %103 : vector<32x128xf32>
    %cst_43 = arith.constant 1.000000e+00 : f32
    %105 = vector.broadcast %cst_43 : f32 to vector<32x128xf32>
    %106 = arith.addf %105, %104 : vector<32x128xf32>
    %107 = arith.divf %105, %106 : vector<32x128xf32>
    %108 = arith.mulf %102, %107 : vector<32x128xf32>
    %c0_44 = arith.constant 0 : index
    %c0_45 = arith.constant 0 : index
    %109 = vector.load %arg6[%c0_44, %c0_45] : memref<8x32xf32, #tpu.memory_space<vmem>>, vector<8x32xf32>
    %cst_46 = arith.constant dense<0.000000e+00> : vector<8x128xf32>
    %110 = tpu.matmul %109, %108, %cst_46 {dimension_numbers = #tpu.dot_dimension_numbers<[1], [0], [0], [1], [0, 0, 1, 1], [], []>} : vector<8x32xf32>, vector<32x128xf32>, vector<8x128xf32> -> vector<8x128xf32>
    %c0_47 = arith.constant 0 : index
    %c0_48 = arith.constant 0 : index
    %111 = vector.load %arg7[%c0_47, %c0_48] : memref<8x1xf32, #tpu.memory_space<vmem>>, vector<8x1xf32>
    %112 = vector.broadcast %111 : vector<8x1xf32> to vector<8x128xf32>
    %113 = arith.addf %110, %112 : vector<8x128xf32>
    %c0_49 = arith.constant 0 : index
    %c0_50 = arith.constant 0 : index
    %114 = vector.load %arg8[%c0_49, %c0_50] : memref<8x128xf32, #tpu.memory_space<vmem>>, vector<8x128xf32>
    tpu.vector_store %arg8[%c0_49, %c0_50], %113 {strides = array<i32>} : memref<8x128xf32, #tpu.memory_space<vmem>>, vector<8x128xf32>,
    return
  }
  func.func @transform_0(%arg0: i32) -> (i32, i32, i32) {
    %c0_i32 = arith.constant 0 : i32
    %c0_i32_0 = arith.constant 0 : i32
    %c0_i32_1 = arith.constant 0 : i32
    return %c0_i32, %c0_i32_0, %arg0 : i32, i32, i32
  }
  func.func @transform_1(%arg0: i32) -> (i32, i32) {
    %c0_i32 = arith.constant 0 : i32
    %c0_i32_0 = arith.constant 0 : i32
    %c0_i32_1 = arith.constant 0 : i32
    return %c0_i32, %c0_i32_0 : i32, i32
  }
  func.func @transform_2(%arg0: i32) -> (i32, i32) {
    %c0_i32 = arith.constant 0 : i32
    %c0_i32_0 = arith.constant 0 : i32
    %c0_i32_1 = arith.constant 0 : i32
    return %c0_i32, %c0_i32_0 : i32, i32
  }
  func.func @transform_3(%arg0: i32) -> (i32, i32) {
    %c0_i32 = arith.constant 0 : i32
    %c0_i32_0 = arith.constant 0 : i32
    %c0_i32_1 = arith.constant 0 : i32
    return %c0_i32, %c0_i32_0 : i32, i32
  }
  func.func @transform_4(%arg0: i32) -> (i32, i32) {
    %c0_i32 = arith.constant 0 : i32
    %c0_i32_0 = arith.constant 0 : i32
    %c0_i32_1 = arith.constant 0 : i32
    return %c0_i32, %c0_i32_0 : i32, i32
  }
  func.func @transform_5(%arg0: i32) -> (i32, i32) {
    %c0_i32 = arith.constant 0 : i32
    %c0_i32_0 = arith.constant 0 : i32
    %c0_i32_1 = arith.constant 0 : i32
    return %c0_i32, %c0_i32_0 : i32, i32
  }
  func.func @transform_6(%arg0: i32) -> (i32, i32) {
    %c0_i32 = arith.constant 0 : i32
    %c0_i32_0 = arith.constant 0 : i32
    %c0_i32_1 = arith.constant 0 : i32
    return %c0_i32, %c0_i32_0 : i32, i32
  }
  func.func @transform_7(%arg0: i32) -> (i32, i32) {
    %c0_i32 = arith.constant 0 : i32
    %c0_i32_0 = arith.constant 0 : i32
    return %c0_i32, %arg0 : i32, i32
  }
}

</mosaic_0001>

<bundles_post_ra>
// kernel: tpu_custom_call.1
= control target key start
LH: loop header
LB: loop body
LE: loop exit
PB: predicated region body
PF: predicated region fallthrough
CT: control target
= control target key end

     0   :  { %12 = vsyncpa [#allocation3], 0  ;;  %s1396_s0 = inlined_call_operand.hbm [shape: f32[9,32,128], index: 0, kind: input, shape index: {}]   ;;  %s1397_s1 = inlined_call_operand.vmem [shape: f32[64,96], index: 1, kind: input, shape index: {}]   ;;  %s1398_s2 = inlined_call_operand.vmem [shape: f32[64,1], index: 2, kind: input, shape index: {}]   ;;  %s1399_s3 = inlined_call_operand.vmem [shape: f32[32,64], index: 3, kind: input, shape index: {}]   ;;  %s1400_s4 = inlined_call_operand.vmem [shape: f32[32,1], index: 4, kind: input, shape index: {}]   ;;  %s1401_s5 = inlined_call_operand.vmem [shape: f32[8,32], index: 5, kind: input, shape index: {}]   ;;  %s1402_s6 = inlined_call_operand.vmem [shape: f32[8,1], index: 6, kind: input, shape index: {}]   ;;  %s1403_s7 = inlined_call_operand.hbm [shape: f32[8,128], index: 7, kind: output, shape index: {}]  }
   0x1   :  { %13 = vsyncpa [#allocation4], 0  ;;  %s1039_s24 = smov [#allocation2]  }
   0x2   :  { %s19_s25 = sshll.u32 %s1039_s24, 4  ;;  %s20_s25 = int_to_ptr.vmem [resolvable:$true] %s19_s25 }
   0x3   :  { %s1003_s26 = scalar_lea.vmem %s20_s25, 4608  ;;  %p1008_p1 = scmp.lt.s32.totalorder %s20_s25, %s20_s25 }
   0x4   :  { %p1004_p0 = scmp.ne.s32.totalorder %s20_s25, %s1003_s26  ;;  %p1009_p2 = scmp.lt.s32.totalorder %s1003_s26, %s1003_s26 }
   0x6   :  { %p1010_p3 = por %p1009_p2, %p1008_p1 }
   0x8   :  { %p1011_p4 = pnand %p1010_p3, %p1004_p0 }
   0xa   :  { %1014 = shalt.err (!%p1011_p4)
}
   0xb   :  { %s1040_s27 = smov 128   ;;  %s1041_s28 = smov 8  }
   0xc   :  { %25 = dma.hbm_to_vmem [thread:$0]  %s1396_s0, 4608, %s20_s25, [#allocation3], %s1040_s27, %s1040_s27, %s1041_s28  }
   0xd   :  { %1035 = dma.done.wait [#allocation3], 4608  }
   0xe   :  { %1036 = vsyncadd [#allocation3], 4294962688  ;;  %v1089_v0 = vld [vmem:[#allocation2] sm:$0xff]  ;;  %v1091_v1 = vld [vmem:[#allocation2 + $0x8] sm:$0xff]  ;;  %vm368_vm0 = vcmask 785408   ;;  %vm582_vm1 = vcmask 523264  }
   0xf   :  { %v1093_v2 = vld [vmem:[#allocation2 + $0x20] sm:$0xff]  ;;  %v1095_v3 = vld [vmem:[#allocation2 + $0x28] sm:$0xff]  ;;  %v1099_v5 = vld [vmem:[#allocation2 + $0x10] sm:$0xff]  ;;  %vm1044_vm2 = vmmov 0   ;;  %vm715_vm3 = vcmask 261120   ;;  %s1045_s30 = smov [#allocation5]  }
  0x10   :  { %v1097_v4 = vld [vmem:[#allocation2 + $0x40] sm:$0xff]  ;;  %v1101_v6 = vld [vmem:[#allocation2 + $0x18] sm:$0xff]  ;;  %v1103_v7 = vld [vmem:[#allocation2 + $0x48] sm:$0xff] }
  0x11   :  { %v1105_v8 = vld [vmem:[#allocation2 + $0x60] sm:$0xff]  ;;  %v1107_v9 = vld [vmem:[#allocation2 + $0x68] sm:$0xff]  ;;  %v1109_v10 = vld [vmem:[#allocation2 + $0x30] sm:$0xff] }
  0x12   :  { %v1111_v11 = vld [vmem:[#allocation2 + $0x50] sm:$0xff]  ;;  %v1115_v13 = vld [vmem:[#allocation2 + $0x80] sm:$0xff]  ;;  %v1117_v14 = vld [vmem:[#allocation2 + $0x88] sm:$0xff]  ;;  %v105_v24 = vsub.f32 %v1093_v2, %v1105_v8  ;;  %v106_v30 = vsub.f32 %v1095_v3, %v1107_v9 }
  0x13   :  { %v1113_v12 = vld [vmem:[#allocation2 + $0x70] sm:$0xff]  ;;  %v1119_v15 = vld [vmem:[#allocation2 + $0x38] sm:$0xff]  ;;  %v1129_v20 = vld [vmem:[#allocation2 + $0xa0] sm:$0xff]  ;;  %v85_v28 = vadd.f32 %v1115_v13, %v1089_v0  ;;  %v86_v29 = vadd.f32 %v1117_v14, %v1091_v1 }
  0x14   :  { %v1121_v16 = vld [vmem:[#allocation2 + $0x58] sm:$0xff]  ;;  %v1125_v18 = vld [vmem:[#allocation2 + $0x90] sm:$0xff]  ;;  %v1131_v21 = vld [vmem:[#allocation2 + $0xc0] sm:$0xff]  ;;  %v107_v41 = vsub.f32 %v1109_v10, %v1113_v12  ;;  %v109_v47 = vmul.f32 0.5, %v105_v24  ;;  %v110_v52 = vmul.f32 0.5, %v106_v30 }
  0x15   :  { %v1123_v17 = vld [vmem:[#allocation2 + $0x78] sm:$0xff]  ;;  %v1133_v22 = vld [vmem:[#allocation2 + $0xc8] sm:$0xff]  ;;  %v1135_v23 = vld [vmem:[#allocation2 + $0xd0] sm:$0xff]  ;;  %v113_v31 = vsub.f32 %v1097_v4, %v1131_v21  ;;  %v87_v35 = vadd.f32 %v1125_v18, %v1099_v5 }
  0x16   :  { %v1127_v19 = vld [vmem:[#allocation2 + $0x98] sm:$0xff]  ;;  %v1139_v25 = vld [vmem:[#allocation2 + $0xa8] sm:$0xff]  ;;  %v1143_v27 = vld [vmem:[#allocation2 + $0xe0] sm:$0xff]  ;;  %v114_v37 = vsub.f32 %v1103_v7, %v1133_v22  ;;  %v115_v42 = vsub.f32 %v1111_v11, %v1135_v23  ;;  %v108_v46 = vsub.f32 %v1119_v15, %v1123_v17  ;;  %v111_v58 = vmul.f32 0.5, %v107_v41 }
  0x17   :  { %v1141_v26 = vld [vmem:[#allocation2 + $0xd8] sm:$0xff]  ;;  %v1153_v32 = vld [vmem:[#allocation2 + $0xb0] sm:$0xff]  ;;  %v1155_v33 = vld [vmem:[#allocation2 + $0xe8] sm:$0xff]  ;;  %v88_v36 = vadd.f32 %v1127_v19, %v1101_v6  ;;  %v121_v49 = vsub.f32 %v1129_v20, %v1143_v27  ;;  %v117_v53 = vmul.f32 0.5, %v113_v31  ;;  %v130_v31 = vmul.f32 %v110_v52, %v110_v52 }
  0x18   :  { %1412 = vst [vmem:[#allocation8_spill] sm:$0xff] %v1153_v32  ;;  %1413 = vst [vmem:[#allocation9_spill] sm:$0xff] %v1155_v33  ;;  %v1157_v34 = vld [vmem:[#allocation2 + $0x100] sm:$0xff]  ;;  %v1165_v38 = vld [vmem:[#allocation2 + $0x108] sm:$0xff]  ;;  %v116_v48 = vsub.f32 %v1121_v16, %v1141_v26  ;;  %v118_v56 = vmul.f32 0.5, %v114_v37  ;;  %v122_v57 = vsub.f32 %v1139_v25, %v1155_v33  ;;  %v119_v59 = vmul.f32 0.5, %v115_v42 }
  0x19   :  { %1414 = vst [vmem:[#allocation10_spill] sm:$0xff] %v1157_v34  ;;  %1415 = vst [vmem:[#allocation11_spill] sm:$0xff] %v1165_v38  ;;  %v1167_v39 = vld [vmem:[#allocation2 + $0x110] sm:$0xff]  ;;  %v1169_v40 = vld [vmem:[#allocation2 + $0x118] sm:$0xff]  ;;  %v89_v50 = vadd.f32 %v85_v28, %v1157_v34  ;;  %v90_v51 = vadd.f32 %v86_v29, %v1165_v38  ;;  %v112_v62 = vmul.f32 0.5, %v108_v46  ;;  %v125_v24 = vmul.f32 0.5, %v121_v49 }
  0x1a   :  { %1416 = vst [vmem:[#allocation12_spill] sm:$0xff] %v1167_v39  ;;  %1417 = vst [vmem:[#allocation13_spill] sm:$0xff] %v1169_v40  ;;  %v1175_v43 = vld [vmem:[#allocation2 + $0xb8] sm:$0xff]  ;;  %v1177_v44 = vld [vmem:[#allocation2 + $0xf0] sm:$0xff]  ;;  %v91_v54 = vadd.f32 %v87_v35, %v1167_v39  ;;  %v92_v55 = vadd.f32 %v88_v36, %v1169_v40  ;;  %v120_v63 = vmul.f32 0.5, %v116_v48  ;;  %v129_v28 = vmul.f32 %v109_v47, %v109_v47 }
  0x1b   :  { %1418 = vst [vmem:[#allocation14_spill] sm:$0xff] %v1177_v44  ;;  %v1179_v45 = vld [vmem:[#allocation2 + $0xf8] sm:$0xff]  ;;  %v123_v60 = vsub.f32 %v1153_v32, %v1177_v44  ;;  %v93_v29 = vmul.f32 0.33333334, %v89_v50  ;;  %v94_v30 = vmul.f32 0.33333334, %v90_v51  ;;  %v133_v35 = vmul.f32 %v117_v53, %v117_v53 }
  0x1c   :  { %1419 = vst [vmem:[#allocation15_spill] sm:$0xff] %v1179_v45  ;;  %v124_v61 = vsub.f32 %v1175_v43, %v1179_v45  ;;  %v95_v36 = vmul.f32 0.33333334, %v91_v54  ;;  %v96_v37 = vmul.f32 0.33333334, %v92_v55  ;;  %v126_v40 = vmul.f32 0.5, %v122_v57 }
  0x1d   :  { %v134_v39 = vmul.f32 %v118_v56, %v118_v56  ;;  %v127_v41 = vmul.f32 0.5, %v123_v60  ;;  %v131_v38 = vmul.f32 %v111_v58, %v111_v58  ;;  %v135_v34 = vmul.f32 %v119_v59, %v119_v59 }
  0x1e   :  { %v128_v42 = vmul.f32 0.5, %v124_v61  ;;  %v132_v44 = vmul.f32 %v112_v62, %v112_v62  ;;  %v136_v32 = vmul.f32 %v120_v63, %v120_v63  ;;  %v137_v33 = vadd.f32 %v133_v35, %v129_v28 }
  0x1f   :  { %v141_v45 = vmul.f32 %v125_v24, %v125_v24  ;;  %v97_v46 = vmul.f32 3.0, %v93_v29  ;;  %v98_v48 = vmul.f32 3.0, %v94_v30  ;;  %v99_v49 = vmul.f32 3.0, %v95_v36  ;;  %v1422_v63 = vld [vmem:[#allocation8_spill] sm:$0xff] }
  0x20   :  { %v138_v47 = vadd.f32 %v134_v39, %v130_v31  ;;  %v142_v50 = vmul.f32 %v126_v40, %v126_v40  ;;  %v100_v51 = vmul.f32 3.0, %v96_v37  ;;  %v139_v52 = vadd.f32 %v135_v34, %v131_v38  ;;  %v1425_v28 = vld [vmem:[#allocation11_spill] sm:$0xff] }
  0x21   :  { %v140_v53 = vadd.f32 %v136_v32, %v132_v44  ;;  %v143_v54 = vmul.f32 %v127_v41, %v127_v41  ;;  %v144_v55 = vmul.f32 %v128_v42, %v128_v42  ;;  %v145_v57 = vadd.f32 %v141_v45, %v137_v33  ;;  %v1427_v41 = vld [vmem:[#allocation13_spill] sm:$0xff] }
  0x22   :  { %v165_v56 = vadd.f32 %v1105_v8, %v1093_v2  ;;  %v166_v58 = vadd.f32 %v1107_v9, %v1095_v3  ;;  %v167_v59 = vadd.f32 %v1113_v12, %v1109_v10  ;;  %v168_v60 = vadd.f32 %v1123_v17, %v1119_v15 }
  0x23   :  { %v1205_v39 = vmul.f32 %v97_v46, %v93_v29  ;;  %v1207_v40 = vmul.f32 %v98_v48, %v94_v30  ;;  %v1209_v32 = vmul.f32 %v99_v49, %v95_v36  ;;  %v146_v34 = vadd.f32 %v142_v50, %v138_v47 }
  0x24   :  { %v1211_v33 = vmul.f32 %v100_v51, %v96_v37  ;;  %v153_v2 = vsub.f32 %v1089_v0, %v93_v29  ;;  %v154_v8 = vsub.f32 %v1091_v1, %v94_v30  ;;  %v155_v3 = vsub.f32 %v1099_v5, %v95_v36 }
  0x25   :  { %v1216_v9 = vadd.f32 %v143_v54, %v139_v52  ;;  %v1218_v10 = vadd.f32 %v144_v55, %v140_v53  ;;  %v1220_v12 = vmul.f32 2.0, %v145_v57  ;;  %v156_v15 = vsub.f32 %v1101_v6, %v96_v37 }
  0x26   :  { %v157_v17 = vsub.f32 %v1115_v13, %v93_v29  ;;  %v158_v38 = vsub.f32 %v1117_v14, %v94_v30  ;;  %v173_v44 = vadd.f32 %v1131_v21, %v1097_v4  ;;  %v174_v0 = vadd.f32 %v1133_v22, %v1103_v7  ;;  %v1420_v4 = vld [vmem:[#allocation9_spill] sm:$0xff]  ;;  %v1421_v7 = vld [vmem:[#allocation10_spill] sm:$0xff] }
  0x27   :  { %v1229_v1 = vmul.f32 2.0, %v146_v34  ;;  %v159_v5 = vsub.f32 %v1125_v18, %v95_v36  ;;  %v175_v45 = vadd.f32 %v1135_v23, %v1111_v11  ;;  %v181_v6 = vadd.f32 %v1143_v27, %v1129_v20  ;;  %v1423_v18 = vld [vmem:[#allocation14_spill] sm:$0xff]  ;;  %v1424_v11 = vld [vmem:[#allocation15_spill] sm:$0xff]  ;;  %v1426_v27 = vld [vmem:[#allocation12_spill] sm:$0xff] }
  0x28   :  { %v160_v13 = vsub.f32 %v1127_v19, %v96_v37  ;;  %v169_v61 = vmul.f32 0.5, %v165_v56  ;;  %v176_v14 = vadd.f32 %v1141_v26, %v1121_v16  ;;  %v182_v21 = vadd.f32 %v1420_v4, %v1139_v25 }
  0x29   :  { %v161_v22 = vsub.f32 %v1421_v7, %v93_v29  ;;  %v170_v62 = vmul.f32 0.5, %v166_v58  ;;  %v183_v24 = vadd.f32 %v1423_v18, %v1422_v63  ;;  %v184_v23 = vadd.f32 %v1424_v11, %v1175_v43 }
  0x2a   :  { %v162_v20 = vsub.f32 %v1425_v28, %v94_v30  ;;  %v163_v19 = vsub.f32 %v1426_v27, %v95_v36  ;;  %v177_v31 = vmul.f32 0.5, %v173_v44  ;;  %v178_v35 = vmul.f32 0.5, %v174_v0 }
  0x2b   :  { %v164_v16 = vsub.f32 %v1427_v41, %v96_v37  ;;  %v171_v26 = vmul.f32 0.5, %v167_v59  ;;  %v179_v42 = vmul.f32 0.5, %v175_v45  ;;  %v185_v25 = vmul.f32 0.5, %v181_v6  ;;  %v312_v37 = vld [vmem:[%s1397_s1] sm:$0xff] }
  0x2c   :  { %v172_v46 = vmul.f32 0.5, %v168_v60  ;;  %v180_v29 = vmul.f32 0.5, %v176_v14  ;;  %v186_v48 = vmul.f32 0.5, %v182_v21  ;;  %v209_v49 = vmul.f32 %v169_v61, %v169_v61  ;;  %891 = vmatprep.mubr.msk.f32.mxu0 %vm368_vm0, %v312_v37 }
  0x2d   :  { %v187_v47 = vmul.f32 0.5, %v183_v24  ;;  %v188_v50 = vmul.f32 0.5, %v184_v23  ;;  %v189_v51 = vmul.f32 %v153_v2, %v153_v2  ;;  %v210_v52 = vmul.f32 %v170_v62, %v170_v62 }
  0x2e   :  { %v190_v43 = vmul.f32 %v154_v8, %v154_v8  ;;  %v193_v53 = vmul.f32 %v157_v17, %v157_v17  ;;  %v213_v30 = vmul.f32 %v177_v31, %v177_v31  ;;  %v214_v54 = vmul.f32 %v178_v35, %v178_v35 }
  0x2f   :  { %v191_v36 = vmul.f32 %v155_v3, %v155_v3  ;;  %v211_v55 = vmul.f32 %v171_v26, %v171_v26  ;;  %v215_v57 = vmul.f32 %v179_v42, %v179_v42  ;;  %v221_v56 = vmul.f32 %v185_v25, %v185_v25 }
  0x30   :  { %v194_v58 = vmul.f32 %v158_v38, %v158_v38  ;;  %v212_v59 = vmul.f32 %v172_v46, %v172_v46  ;;  %v216_v60 = vmul.f32 %v180_v29, %v180_v29  ;;  %v217_v34 = vadd.f32 %v213_v30, %v209_v49  ;;  %v324_v29 = vld [vmem:[%s1398_s2 + $0x20] sm:$0xff] }
  0x31   :  { %v218_v44 = vadd.f32 %v214_v54, %v210_v52  ;;  %v222_v0 = vmul.f32 %v186_v48, %v186_v48  ;;  %v237_v2 = vadd.f32 %v1207_v40, %v1205_v39  ;;  %v192_v8 = vmul.f32 %v156_v15, %v156_v15  ;;  %v327_v15 = vld [vmem:[%s1398_s2 + $0x38] sm:$0xff] }
  0x32   :  { %v195_v17 = vmul.f32 %v159_v5, %v159_v5  ;;  %v197_v3 = vadd.f32 %v193_v53, %v189_v51  ;;  %v201_v45 = vmul.f32 %v161_v22, %v161_v22  ;;  %v219_v6 = vadd.f32 %v215_v57, %v211_v55  ;;  %v325_v5 = vld [vmem:[%s1398_s2 + $0x28] sm:$0xff]  ;;  %v322_v53 = vld [vmem:[%s1398_s2 + $0x10] sm:$0xff] }
  0x33   :  { %v223_v61 = vmul.f32 %v187_v47, %v187_v47  ;;  %v225_v14 = vadd.f32 %v221_v56, %v217_v34  ;;  %v238_v38 = vadd.f32 %v237_v2, %v1209_v32  ;;  %v196_v4 = vmul.f32 %v160_v13, %v160_v13  ;;  %v320_v56 = vld [vmem:[%s1398_s2] sm:$0xff] }
  0x34   :  { %v198_v21 = vadd.f32 %v194_v58, %v190_v43  ;;  %v202_v7 = vmul.f32 %v162_v20, %v162_v20  ;;  %v224_v62 = vmul.f32 %v188_v50, %v188_v50  ;;  %v220_v63 = vadd.f32 %v216_v60, %v212_v59  ;;  %v561_v58 = vld [vmem:[%s1400_s4 + $0x18] sm:$0xff]  ;;  %v560_v60 = vld [vmem:[%s1400_s4 + $0x10] sm:$0xff]  ;;  %v558_v2 = vld [vmem:[%s1400_s4] sm:$0xff] }
  0x35   :  { %v226_v18 = vadd.f32 %v222_v0, %v218_v44  ;;  %v239_v24 = vadd.f32 %v238_v38, %v1211_v33  ;;  %v1264_v22 = vmul.f32 2.0, %v1216_v9  ;;  %v199_v11 = vadd.f32 %v195_v17, %v191_v36  ;;  %v326_v9 = vld [vmem:[%s1398_s2 + $0x30] sm:$0xff]  ;;  %v321_v36 = vld [vmem:[%s1398_s2 + $0x8] sm:$0xff]  ;;  %v709_v17 = vld [vmem:[%s1402_s6] sm:$0xff] }
  0x36   :  { %v203_v13 = vmul.f32 %v163_v19, %v163_v19  ;;  %v1042_v23 = vmov 0   ;;  %v205_v28 = vadd.f32 %v201_v45, %v197_v3  ;;  %v227_v20 = vadd.f32 %v223_v61, %v219_v6  ;;  %v559_v44 = vld [vmem:[%s1400_s4 + $0x8] sm:$0xff] }
  0x37   :  { %943 = vset.pattern.permute.xlu0 %v1042_v23  ;;  %v229_v27 = vmul.f32 2.0, %v225_v14  ;;  %v240_v31 = vadd.f32 %v239_v24, %v1220_v12  ;;  %944 = vset.pattern.permute.xlu1 %v1042_v23  ;;  %v1268_v35 = vmul.f32 2.0, %v1218_v10  ;;  %v200_v41 = vadd.f32 %v196_v4, %v192_v8 }
  0x38   :  { %365 = vperm.xlu0 %943, %v327_v15   ;;  %v204_v26 = vmul.f32 %v164_v16, %v164_v16  ;;  %355 = vperm.xlu1 %944, %v325_v5   ;;  %v206_v19 = vadd.f32 %v202_v7, %v198_v21  ;;  %v228_v42 = vadd.f32 %v224_v62, %v220_v63  ;;  %v230_v25 = vmul.f32 2.0, %v226_v18  ;;  %v323_v16 = vld [vmem:[%s1398_s2 + $0x18] sm:$0xff]  ;;  %s796_s2 = sshll.u32 %s1045_s30, 4  ;;  %s797_s2 = int_to_ptr.vmem [resolvable:$true] %s796_s2 }
  0x39   :  { %v241_v46 = vadd.f32 %v240_v31, %v1229_v1  ;;  %v207_v48 = vadd.f32 %v203_v13, %v199_v11  ;;  %v231_v49 = vmul.f32 2.0, %v227_v20  ;;  %v233_v10 = vadd.f32 %v229_v27, %v205_v28  ;;  %s1015_s0 = scalar_lea.vmem %s797_s2, 128  ;;  %p1020_p6 = scmp.lt.s32.totalorder %s797_s2, %s797_s2 }
  0x3a   :  { %v208_v50 = vadd.f32 %v204_v26, %v200_v41  ;;  %v232_v51 = vmul.f32 2.0, %v228_v42  ;;  %v234_v52 = vadd.f32 %v230_v25, %v206_v19  ;;  %p1016_p5 = scmp.ne.s32.totalorder %s797_s2, %s1015_s0  ;;  %p1021_p7 = scmp.lt.s32.totalorder %s1015_s0, %s1015_s0 }
  0x3b   :  { %v242_v47 = vadd.f32 %v241_v46, %v1264_v22  ;;  %v235_v30 = vadd.f32 %v231_v49, %v207_v48 }
  0x3c   :  { %360 = vperm.xlu0 %943, %v326_v9   ;;  %350 = vperm.xlu1 %944, %v324_v29   ;;  %v236_v55 = vadd.f32 %v232_v51, %v208_v50  ;;  %p1022_p8 = por %p1021_p7, %p1020_p6 }
  0x3d   :  { %v243_v43 = vadd.f32 %v242_v47, %v1268_v35 }
  0x3e   :  { %p1023_p9 = pnand %p1022_p8, %p1016_p5 }
  0x3f   :  { %v244_v54 = vadd.f32 %v243_v43, %v233_v10 }
  0x40   :  { %345 = vperm.xlu0 %943, %v323_v16   ;;  %340 = vperm.xlu1 %944, %v322_v53  }
  0x41   :  { %v245_v57 = vadd.f32 %v244_v54, %v234_v52 }
  0x43   :  { %v246_v37 = vadd.f32 %v245_v57, %v235_v30 }
  0x44   :  { %335 = vperm.xlu0 %943, %v321_v36   ;;  %330 = vperm.xlu1 %944, %v320_v56  }
  0x45   :  { %v247_v59 = vadd.f32 %v246_v37, %v236_v55 }
  0x47   :  { %v248_v34 = vrot.slane %v247_v59, 4 }
  0x48   :  { %579 = vperm.xlu0 %943, %v561_v58   ;;  %574 = vperm.xlu1 %944, %v560_v60  }
  0x49   :  { %v249_v0 = vadd.f32 %v248_v34, %v247_v59 }
  0x4b   :  { %v250_v8 = vrot.slane %v249_v0, 2 }
  0x4c   :  { %569 = vperm.xlu0 %943, %v559_v44   ;;  %564 = vperm.xlu1 %944, %v558_v2   ;;  %v314_v2 = vld [vmem:[%s1397_s1 + $0x10] sm:$0xff] }
  0x4d   :  { %v251_v3 = vadd.f32 %v250_v8, %v249_v0  ;;  %v313_v0 = vld [vmem:[%s1397_s1 + $0x8] sm:$0xff]  ;;  %v315_v8 = vld [vmem:[%s1397_s1 + $0x18] sm:$0xff] }
  0x4f   :  { %v252_v45 = vrot.slane %v251_v3, 1 }
  0x50   :  { %712 = vperm.xlu0 %943, %v709_v17   ;;  %v316_v17 = vld [vmem:[%s1397_s1 + $0x20] sm:$0xff] }
  0x51   :  { %v253_v6 = vadd.f32 %v252_v45, %v251_v3  ;;  %v317_v3 = vld [vmem:[%s1397_s1 + $0x28] sm:$0xff]  ;;  %v318_v45 = vld [vmem:[%s1397_s1 + $0x30] sm:$0xff] }
  0x53   :  { %v255_v61 = vmul.f32 0.010416667, %v253_v6  ;;  %v319_v6 = vld [vmem:[%s1397_s1 + $0x38] sm:$0xff] }
  0x55   :  { %v1307_v14 = vsub.f32 %v1205_v39, %v255_v61  ;;  %v1310_v38 = vsub.f32 %v1207_v40, %v255_v61  ;;  %v1313_v4 = vsub.f32 %v1209_v32, %v255_v61  ;;  %v1316_v21 = vsub.f32 %v1211_v33, %v255_v61 }
  0x56   :  { %v260_v63 = vsub.f32 %v1220_v12, %v255_v61  ;;  %v261_v40 = vsub.f32 %v1229_v1, %v255_v61  ;;  %v262_v33 = vsub.f32 %v1264_v22, %v255_v61  ;;  %v263_v5 = vsub.f32 %v1268_v35, %v255_v61 }
  0x57   :  { %v268_v7 = vmul.f32 %v1307_v14, %v1307_v14  ;;  %v269_v62 = vmul.f32 %v1310_v38, %v1310_v38  ;;  %v270_v39 = vmul.f32 %v1313_v4, %v1313_v4  ;;  %v271_v32 = vmul.f32 %v1316_v21, %v1316_v21 }
  0x58   :  { %v272_v24 = vmul.f32 %v260_v63, %v260_v63  ;;  %v273_v11 = vmul.f32 %v261_v40, %v261_v40  ;;  %v264_v23 = vsub.f32 %v233_v10, %v255_v61  ;;  %v274_v28 = vmul.f32 %v262_v33, %v262_v33 }
  0x59   :  { %v280_v18 = vadd.f32 %v269_v62, %v268_v7  ;;  %v265_v20 = vsub.f32 %v234_v52, %v255_v61  ;;  %v275_v27 = vmul.f32 %v263_v5, %v263_v5  ;;  %v266_v41 = vsub.f32 %v235_v30, %v255_v61 }
  0x5a   :  { %v276_v1 = vmul.f32 %v264_v23, %v264_v23  ;;  %v267_v9 = vsub.f32 %v236_v55, %v255_v61  ;;  %v554_v61 = vld [vmem:[%s1399_s3] sm:$0xff] }
  0x5b   :  { %v281_v15 = vadd.f32 %v280_v18, %v270_v39  ;;  %v277_v19 = vmul.f32 %v265_v20, %v265_v20  ;;  %v278_v25 = vmul.f32 %v266_v41, %v266_v41  ;;  %919 = vmatprep.mubr.msk.f32.mxu1 %vm582_vm1, %v554_v61 }
  0x5c   :  { %v279_v46 = vmul.f32 %v267_v9, %v267_v9 }
  0x5d   :  { %v282_v13 = vadd.f32 %v281_v15, %v271_v32 }
  0x5f   :  { %v283_v12 = vadd.f32 %v282_v13, %v272_v24 }
  0x61   :  { %v284_v31 = vadd.f32 %v283_v12, %v273_v11 }
  0x63   :  { %v285_v26 = vadd.f32 %v284_v31, %v274_v28 }
  0x65   :  { %v286_v42 = vadd.f32 %v285_v26, %v275_v27 }
  0x67   :  { %v287_v22 = vadd.f32 %v286_v42, %v276_v1 }
  0x69   :  { %v288_v29 = vadd.f32 %v287_v22, %v277_v19 }
  0x6b   :  { %v289_v48 = vadd.f32 %v288_v29, %v278_v25 }
  0x6d   :  { %v290_v35 = vadd.f32 %v289_v48, %v279_v46 }
  0x6f   :  { %v291_v49 = vrot.slane %v290_v35, 4 }
  0x71   :  { %v292_v47 = vadd.f32 %v291_v49, %v290_v35 }
  0x73   :  { %v293_v10 = vrot.slane %v292_v47, 2 }
  0x75   :  { %v294_v16 = vadd.f32 %v293_v10, %v292_v47 }
  0x77   :  { %v295_v50 = vrot.slane %v294_v16, 1 }
  0x79   :  { %v296_v51 = vadd.f32 %v295_v50, %v294_v16 }
  0x7b   :  { %v297_v52 = vmul.f32 0.010416667, %v296_v51 }
  0x7d   :  { %v298_v43 = vadd.f32 1e-05, %v297_v52 }
  0x7f   :  { %945 = vrsqrt.f32 %v298_v43 }
  0x8c   :  { %v946_v53 = vpop.eup %945 }
  0x8d   :  { %v311_v30 = vmul.f32 %v946_v53, %v267_v9  ;;  %v310_v54 = vmul.f32 %v946_v53, %v266_v41  ;;  %v309_v36 = vmul.f32 %v946_v53, %v265_v20  ;;  %v308_v55 = vmul.f32 %v946_v53, %v264_v23 }
  0x8e   :  { %v307_v57 = vmul.f32 %v946_v53, %v263_v5  ;;  %v306_v56 = vmul.f32 %v946_v53, %v262_v33  ;;  %v305_v37 = vmul.f32 %v946_v53, %v261_v40  ;;  %v304_v58 = vmul.f32 %v946_v53, %v260_v63 }
  0x8f   :  { %867 = vmatprep.subr.mxu0 %v311_v30  ;;  %v303_v59 = vmul.f32 %v946_v53, %v1316_v21  ;;  %v302_v60 = vmul.f32 %v946_v53, %v1313_v4  ;;  %v301_v34 = vmul.f32 %v946_v53, %v1310_v38  ;;  %v300_v44 = vmul.f32 %v946_v53, %v1307_v14 }
  0x90   :  { %868 = vmatpush3.msra.mxu0 %v311_v30 }
  0x91   :  { %869 = vmatprep.subr.mxu0 %v310_v54 }
  0x92   :  { %870 = vmatpush3.msra.mxu0 %v310_v54 }
  0x93   :  { %871 = vmatprep.subr.mxu0 %v309_v36 }
  0x94   :  { %872 = vmatpush3.msra.mxu0 %v309_v36 }
  0x95   :  { %873 = vmatprep.subr.mxu0 %v308_v55 }
  0x96   :  { %874 = vmatpush3.msra.mxu0 %v308_v55 }
  0x97   :  { %875 = vmatprep.subr.mxu0 %v307_v57 }
  0x98   :  { %876 = vmatpush3.msra.mxu0 %v307_v57 }
  0x99   :  { %877 = vmatprep.subr.mxu0 %v306_v56 }
  0x9a   :  { %878 = vmatpush3.msra.mxu0 %v306_v56 }
  0x9b   :  { %879 = vmatprep.subr.mxu0 %v305_v37 }
  0x9c   :  { %880 = vmatpush3.msra.mxu0 %v305_v37 }
  0x9d   :  { %881 = vmatprep.subr.mxu0 %v304_v58 }
  0x9e   :  { %882 = vmatpush3.msra.mxu0 %v304_v58 }
  0x9f   :  { %883 = vmatprep.subr.mxu0 %v303_v59 }
  0xa0   :  { %884 = vmatpush3.msra.mxu0 %v303_v59 }
  0xa1   :  { %885 = vmatprep.subr.mxu0 %v302_v60 }
  0xa2   :  { %886 = vmatpush3.msra.mxu0 %v302_v60 }
  0xa3   :  { %887 = vmatprep.subr.mxu0 %v301_v34 }
  0xa4   :  { %888 = vmatpush3.msra.mxu0 %v301_v34 }
  0xa5   :  { %889 = vmatprep.subr.mxu0 %v300_v44 }
  0xa6   :  { %890 = vmatpush3.msra.mxu0 %v300_v44 }
  0xa7   :  { %892 = vmatmul.mubr.msk.f32.vlgmr.msra.gmra.mxu0 %vm368_vm0, %v313_v0 }
  0xa8   :  { %894 = vmatprep.mubr.msk.f32.mxu0 %vm368_vm0, %v314_v2 }
  0xab   :  { %895 = vmatmul.mubr.msk.f32.gmra.mxu0 %vm368_vm0, %v315_v8 }
  0xac   :  { %897 = vmatprep.mubr.msk.f32.mxu0 %vm368_vm0, %v316_v17 }
  0xaf   :  { %898 = vmatmul.mubr.msk.f32.gmra.mxu0 %vm368_vm0, %v317_v3 }
  0xb0   :  { %900 = vmatprep.mubr.msk.f32.mxu0 %vm368_vm0, %v318_v45 }
  0xb3   :  { %901 = vmatmul.mubr.msk.f32.gmra.mxu0 %vm368_vm0, %v319_v6  ;;  %v366_v14 = vpop.permute.xlu0 %365  ;;  %v356_v38 = vpop.permute.xlu1 %355 }
  0xb7   :  { %v361_v21 = vpop.permute.xlu0 %360  ;;  %v351_v7 = vpop.permute.xlu1 %350 }
  0xbb   :  { %v346_v40 = vpop.permute.xlu0 %345  ;;  %v341_v32 = vpop.permute.xlu1 %340 }
  0xbf   :  { %v336_v23 = vpop.permute.xlu0 %335  ;;  %v331_v27 = vpop.permute.xlu1 %330 }
 0x167   :  { %v893_v4 = vpop.f32.mrf.mxu0 }
 0x168   :  { %v1371_v1 = vadd.f32 %v893_v4, %v336_v23  ;;  %v557_v4 = vld [vmem:[%s1399_s3 + $0x18] sm:$0xff] }
 0x169   :  { %v459_v62 = vpop.f32.mrf.mxu0 }
 0x16a   :  { %v460_v19 = vadd.f32 %v459_v62, %v331_v27  ;;  %v814_v22 = vmul.f32 -1.442695, %v1371_v1  ;;  %v575_v62 = vpop.permute.xlu1 %574 }
 0x16b   :  { %v896_v63 = vpop.f32.mrf.mxu0 }
 0x16c   :  { %v1366_v24 = vadd.f32 %v896_v63, %v346_v40  ;;  %v813_v46 = vmul.f32 -1.442695, %v460_v19 }
 0x16d   :  { %v469_v39 = vpop.f32.mrf.mxu0 }
 0x16e   :  { %v1368_v28 = vadd.f32 %v469_v39, %v341_v32  ;;  %v816_v31 = vmul.f32 -1.442695, %v1366_v24  ;;  %v565_v32 = vpop.permute.xlu1 %564 }
 0x16f   :  { %v899_v18 = vpop.f32.mrf.mxu0 }
 0x170   :  { %v485_v33 = vadd.f32 %v899_v18, %v356_v38  ;;  %v815_v42 = vmul.f32 -1.442695, %v1368_v28  ;;  %v556_v38 = vld [vmem:[%s1399_s3 + $0x10] sm:$0xff] }
 0x171   :  { %v479_v15 = vpop.f32.mrf.mxu0 }
 0x172   :  { %v818_v5 = vmul.f32 -1.442695, %v485_v33  ;;  %v480_v11 = vadd.f32 %v479_v15, %v351_v7  ;;  %v580_v7 = vpop.permute.xlu0 %579 }
 0x173   :  { %v902_v13 = vpop.f32.mrf.mxu0 }
 0x174   :  { %v817_v12 = vmul.f32 -1.442695, %v480_v11  ;;  %v495_v20 = vadd.f32 %v902_v13, %v366_v14  ;;  %947 = vpow2.f32 %v818_v5  ;;  %v555_v14 = vld [vmem:[%s1399_s3 + $0x8] sm:$0xff] }
 0x175   :  { %v489_v41 = vpop.f32.mrf.mxu0 }
 0x176   :  { %v820_v26 = vmul.f32 -1.442695, %v495_v20  ;;  %v490_v9 = vadd.f32 %v489_v41, %v361_v21  ;;  %949 = vpow2.f32 %v817_v12  ;;  %v1043_v21 = vmov 0.0   ;;  %v570_v63 = vpop.permute.xlu0 %569 }
 0x178   :  { %951 = vpow2.f32 %v820_v26  ;;  %v819_v25 = vmul.f32 -1.442695, %v490_v9 }
 0x179   :  { %953 = vpow2.f32 %v816_v31 }
 0x17a   :  { %955 = vpow2.f32 %v819_v25 }
 0x17b   :  { %957 = vpow2.f32 %v815_v42 }
 0x17c   :  { %959 = vpow2.f32 %v814_v22 }
 0x17d   :  { %961 = vpow2.f32 %v813_v46 }
 0x181   :  { %v948_v29 = vpop.eup %947 }
 0x182   :  { %v527_v49 = vadd.f32 1.0, %v948_v29 }
 0x183   :  { %v950_v48 = vpop.eup %949 }
 0x184   :  { %v526_v50 = vadd.f32 1.0, %v950_v48 }
 0x185   :  { %v952_v35 = vpop.eup %951 }
 0x186   :  { %v954_v47 = vpop.eup %953  ;;  %v529_v10 = vadd.f32 1.0, %v952_v35 }
 0x187   :  { %v956_v16 = vpop.eup %955  ;;  %v525_v43 = vadd.f32 1.0, %v954_v47  ;;  %v708_v47 = vld [vmem:[%s1401_s5] sm:$0xff] }
 0x188   :  { %963 = vrcp.f32 %v529_v10  ;;  %v528_v51 = vadd.f32 1.0, %v956_v16  ;;  %v958_v52 = vpop.eup %957  ;;  %v713_v10 = vpop.permute.xlu0 %712 }
 0x189   :  { %965 = vrcp.f32 %v527_v49  ;;  %v960_v53 = vpop.eup %959  ;;  %v524_v30 = vadd.f32 1.0, %v958_v52 }
 0x18a   :  { %967 = vrcp.f32 %v528_v51  ;;  %v962_v54 = vpop.eup %961  ;;  %v523_v36 = vadd.f32 1.0, %v960_v53 }
 0x18b   :  { %969 = vrcp.f32 %v526_v50  ;;  %v522_v55 = vadd.f32 1.0, %v962_v54 }
 0x18c   :  { %971 = vrcp.f32 %v525_v43 }
 0x18d   :  { %973 = vrcp.f32 %v524_v30 }
 0x18e   :  { %975 = vrcp.f32 %v523_v36 }
 0x18f   :  { %977 = vrcp.f32 %v522_v55 }
 0x195   :  { %v964_v57 = vpop.eup %963 }
 0x196   :  { %v966_v56 = vpop.eup %965  ;;  %v553_v37 = vmul.f32 %v964_v57, %v495_v20 }
 0x197   :  { %v968_v58 = vpop.eup %967  ;;  %v551_v34 = vmul.f32 %v966_v56, %v485_v33 }
 0x198   :  { %v552_v59 = vmul.f32 %v968_v58, %v490_v9  ;;  %903 = vmatprep.subr.mxu1 %v553_v37  ;;  %v970_v60 = vpop.eup %969 }
 0x199   :  { %904 = vmatpush3.msra.mxu1 %v553_v37  ;;  %v972_v44 = vpop.eup %971  ;;  %v550_v0 = vmul.f32 %v970_v60, %v480_v11 }
 0x19a   :  { %905 = vmatprep.subr.mxu1 %v552_v59  ;;  %v974_v2 = vpop.eup %973  ;;  %v549_v8 = vmul.f32 %v972_v44, %v1366_v24 }
 0x19b   :  { %906 = vmatpush3.msra.mxu1 %v552_v59  ;;  %v976_v17 = vpop.eup %975  ;;  %v548_v3 = vmul.f32 %v974_v2, %v1368_v28 }
 0x19c   :  { %907 = vmatprep.subr.mxu1 %v551_v34  ;;  %v978_v45 = vpop.eup %977  ;;  %v547_v6 = vmul.f32 %v976_v17, %v1371_v1 }
 0x19d   :  { %908 = vmatpush3.msra.mxu1 %v551_v34  ;;  %v546_v61 = vmul.f32 %v978_v45, %v460_v19 }
 0x19e   :  { %909 = vmatprep.subr.mxu1 %v550_v0 }
 0x19f   :  { %910 = vmatpush3.msra.mxu1 %v550_v0 }
 0x1a0   :  { %911 = vmatprep.subr.mxu1 %v549_v8 }
 0x1a1   :  { %912 = vmatpush3.msra.mxu1 %v549_v8 }
 0x1a2   :  { %913 = vmatprep.subr.mxu1 %v548_v3 }
 0x1a3   :  { %914 = vmatpush3.msra.mxu1 %v548_v3 }
 0x1a4   :  { %915 = vmatprep.subr.mxu1 %v547_v6 }
 0x1a5   :  { %916 = vmatpush3.msra.mxu1 %v547_v6 }
 0x1a6   :  { %917 = vmatprep.subr.mxu1 %v546_v61 }
 0x1a7   :  { %918 = vmatpush3.msra.mxu1 %v546_v61 }
 0x1a8   :  { %920 = vmatmul.mubr.msk.f32.vlgmr.msra.gmra.mxu1 %vm582_vm1, %v555_v14  ;;  %925 = vmatprep.subr.mxu1 %v1043_v21 }
 0x1a9   :  { %922 = vmatprep.mubr.msk.f32.mxu1 %vm582_vm1, %v556_v38 }
 0x1ac   :  { %923 = vmatmul.mubr.msk.f32.gmra.mxu1 %vm582_vm1, %v557_v4 }
 0x1ad   :  { %933 = vmatprep.mubr.msk.f32.mxu1 %vm1044_vm2, %v1043_v21 }
 0x268   :  { %v921_v39 = vpop.f32.mrf.mxu1 }
 0x269   :  { %v667_v40 = vadd.f32 %v921_v39, %v570_v63 }
 0x26a   :  { %v661_v18 = vpop.f32.mrf.mxu1 }
 0x26b   :  { %v826_v33 = vmul.f32 -1.442695, %v667_v40  ;;  %v662_v24 = vadd.f32 %v661_v18, %v565_v32 }
 0x26c   :  { %v924_v15 = vpop.f32.mrf.mxu1 }
 0x26d   :  { %v825_v5 = vmul.f32 -1.442695, %v662_v24  ;;  %v677_v11 = vadd.f32 %v924_v15, %v580_v7  ;;  %979 = vpow2.f32 %v826_v33 }
 0x26e   :  { %v671_v13 = vpop.f32.mrf.mxu1 }
 0x26f   :  { %v828_v23 = vmul.f32 -1.442695, %v677_v11  ;;  %v672_v28 = vadd.f32 %v671_v13, %v575_v62  ;;  %981 = vpow2.f32 %v825_v5 }
 0x271   :  { %983 = vpow2.f32 %v828_v23  ;;  %v827_v12 = vmul.f32 -1.442695, %v672_v28 }
 0x273   :  { %985 = vpow2.f32 %v827_v12 }
 0x27a   :  { %v980_v20 = vpop.eup %979 }
 0x27b   :  { %v693_v41 = vadd.f32 1.0, %v980_v20 }
 0x27c   :  { %v982_v27 = vpop.eup %981 }
 0x27d   :  { %v692_v9 = vadd.f32 1.0, %v982_v27 }
 0x27e   :  { %v984_v31 = vpop.eup %983 }
 0x27f   :  { %v695_v1 = vadd.f32 1.0, %v984_v31 }
 0x280   :  { %v986_v26 = vpop.eup %985 }
 0x281   :  { %987 = vrcp.f32 %v695_v1  ;;  %v694_v19 = vadd.f32 1.0, %v986_v26 }
 0x282   :  { %989 = vrcp.f32 %v693_v41 }
 0x283   :  { %991 = vrcp.f32 %v694_v19 }
 0x284   :  { %993 = vrcp.f32 %v692_v9 }
 0x28e   :  { %v988_v42 = vpop.eup %987 }
 0x28f   :  { %v990_v25 = vpop.eup %989  ;;  %v707_v22 = vmul.f32 %v988_v42, %v677_v11 }
 0x290   :  { %v992_v46 = vpop.eup %991  ;;  %v705_v35 = vmul.f32 %v990_v25, %v667_v40 }
 0x291   :  { %v706_v29 = vmul.f32 %v992_v46, %v672_v28  ;;  %926 = vmatpush3.msra.mxu1 %v707_v22  ;;  %v994_v48 = vpop.eup %993 }
 0x292   :  { %927 = vmatprep.subr.mxu1 %v1043_v21  ;;  %v704_v49 = vmul.f32 %v994_v48, %v662_v24 }
 0x293   :  { %928 = vmatpush3.msra.mxu1 %v706_v29 }
 0x294   :  { %929 = vmatprep.subr.mxu1 %v1043_v21 }
 0x295   :  { %930 = vmatpush3.msra.mxu1 %v705_v35 }
 0x296   :  { %931 = vmatprep.subr.mxu1 %v1043_v21 }
 0x297   :  { %932 = vmatpush3.msra.mxu1 %v704_v49 }
 0x298   :  { %934 = vmatmul.mubr.msk.f32.vlgmr.msra.gmra.mxu1 %vm715_vm3, %v708_v47 }
 0x358   :  { %v785_v16 = vpop.f32.mrf.mxu1 }
 0x359   :  { %v786_v50 = vadd.f32 %v785_v16, %v713_v10 }
 0x35a   :  { %v935_v51 = vpop.f32.mrf.mxu1 }
 0x35b   :  { %789 = vst [vmem:[#allocation5] sm:$0xff] %v786_v50 }
 0x35c   :  { %1026 = shalt.err (!%p1023_p9)
}
 0x35d   :  { %799 = dma.vmem_to_hbm [thread:$0]  %s797_s2, 128, %s1403_s7, [#allocation4]  }
 0x35e   :  { %1037 = dma.done.wait [#allocation4], 128  }
 0x35f   :  { %1038 = vsyncadd [#allocation4], 4294967168 }
 0x360   :  { %803 = vsyncpa [#allocation3], 1 }
 0x361   :  { %804 = vsyncpa [#allocation4], 1 }

</bundles_post_ra>
